<compile_context>
chip_gen: v7x
topology: tpu7x:2x2x1
jax: 0.10.0
libtpu: 0.0.40
codegen_flags: <defaults>
</compile_context>

<pallas_src>
import functools
import math

import jax
import jax.numpy as jnp
from jax.experimental import pallas as pl
from jax.experimental.pallas import tpu as pltpu


def _mha_kernel(x_ref, wqkv_ref, bqkv_ref, wd_ref, vecs_ref, o_ref, *, eps):
    bb, S, H = x_ref.shape
    R = bb * S

    x_blk = x_ref[...]                                  # (bb, S, H), f32 or bf16
    x = x_blk.astype(jnp.float32).reshape(R, H)         # f32 copy for residual/LN
    x_bf = x_blk.reshape(R, H).astype(jnp.bfloat16)     # bf16 MXU operand

    # Fused QKV projection: one MXU matmul with N = 3H. The 1/sqrt(head_dim)
    # scale is already folded into the Q third of the weights / bias.
    qkv = jnp.dot(x_bf, wqkv_ref[...], preferred_element_type=jnp.float32)
    qkv = qkv + bqkv_ref[...]                            # (R, 3H) f32

    q = qkv[:, :H].reshape(bb, S, H).astype(jnp.bfloat16)
    k = qkv[:, H:2 * H].reshape(bb, S, H).astype(jnp.bfloat16)
    v = qkv[:, 2 * H:].reshape(bb, S, H).astype(jnp.bfloat16)

    # Attention scores: contract the lane (H) axis of both Q and K directly
    # (batched dot_general, no explicit K transpose).
    scores = jax.lax.dot_general(
        q, k, (((2,), (2,)), ((0,), (0,))),
        preferred_element_type=jnp.float32)              # (bb, S, S)

    # Numerically stable softmax in f32; reciprocal goes to the EUP.
    # NOTE: approx=True means probabilities sum to 1 only to ~1e-3 relative —
    # well inside the bf16 tolerance used for this kernel.
    m = jnp.max(scores, axis=-1, keepdims=True)
    e = jnp.exp(scores - m)                              # unnormalized, <= 1
    l = jnp.sum(e, axis=-1, keepdims=True)               # (bb, S, 1)

    if S > H:
        # Normalize AFTER the PV matmul: (S,H) VPU multiply instead of (S,S).
        ctx = jax.lax.dot_general(
            e.astype(jnp.bfloat16), v, (((2,), (1,)), ((0,), (0,))),
            preferred_element_type=jnp.float32)          # (bb, S, H)
        ctx = ctx * pl.reciprocal(l, approx=True)
    else:
        p = e * pl.reciprocal(l, approx=True)
        ctx = jax.lax.dot_general(
            p.astype(jnp.bfloat16), v, (((2,), (1,)), ((0,), (0,))),
            preferred_element_type=jnp.float32)          # (bb, S, H)

    vecs = vecs_ref[...]                                 # (3, H) f32
    bd, gamma, beta = vecs[0:1, :], vecs[1:2, :], vecs[2:3, :]

    out = jnp.dot(ctx.reshape(R, H).astype(jnp.bfloat16), wd_ref[...],
                  preferred_element_type=jnp.float32) + bd   # (R, H)

    # Residual + LayerNorm in f32 (biased variance, eps=1e-12, torch eval).
    y = x + out
    mu = jnp.mean(y, axis=-1, keepdims=True)
    d = y - mu
    var = jnp.mean(d * d, axis=-1, keepdims=True)
    norm = d * jax.lax.rsqrt(var + eps)
    o_ref[...] = (norm * gamma + beta).reshape(bb, S, H).astype(o_ref.dtype)


def _rows_target_for_device():
    """Per-generation M-rows target for the fused projections.

    v5e: 4x128^2 MXU -> 128 rows already saturate it (bigger blocks only grow
    VMEM).  v6e: single TC + 128 MiB VMEM -> bigger blocks amortize the ~600
    cycle per-step overhead.  v7x / unknown: 256 (64 MiB VMEM per TC)."""
    try:
        kind = jax.devices()[0].device_kind.lower()
    except Exception:
        return 256
    if "v5" in kind or "5 lite" in kind:
        return 128
    if "v6" in kind or "6 lite" in kind:
        return 512
    return 256


def _pick_batch_block(B, S, rows_target):
    """Fold batch elements so the projections see roughly `rows_target`
    lane-dense rows, while keeping >= 2 grid steps when the batch allows so
    v7x's second TensorCore gets work."""
    bb = max(1, min(B, rows_target // max(S, 1)))
    while B % bb:
        bb -= 1
    if B // bb < 2 and B >= 2:
        bb = max(1, bb // 2)
        while B % bb:
            bb -= 1
    return bb


def _vmem_limit_bytes(bb, S, H, x_bytes, out_bytes, weight_bufs):
    """Derive the scoped-VMEM limit from the actual resident set, capped per
    generation (headroom under v7x's 64 MiB; up to ~100 MiB on 128 MiB parts)."""
    io_blocks = 2 * bb * S * H * (x_bytes + out_bytes)       # double-buffered x / out tiles
    weights = weight_bufs * 2 * (3 * H * H + H * H)          # bf16 Wqkv + Wd
    vectors = weight_bufs * 4 * (3 * H + 3 * H)              # f32 bqkv + [bd;gamma;beta]
    # live temporaries: qkv (f32 + bf16), scores + exp (f32), ctx/out/y (f32)
    inter = bb * S * (3 * H * (4 + 2) + 2 * S * 4 + 4 * H * 4)
    est = io_blocks + weights + vectors + inter
    try:
        phys = pltpu.get_tpu_info().vmem_capacity_bytes
    except Exception:
        phys = 128 * 1024 * 1024
    cap = 56 * 1024 * 1024 if phys <= 64 * 1024 * 1024 else 100 * 1024 * 1024
    return int(max(16 * 1024 * 1024, min(cap, 1.25 * est + 4 * 1024 * 1024)))


@functools.lru_cache(maxsize=None)
def _single_buffering_supported():
    """One-time, compile-only capability probe for pl.Buffered(1).

    The real MHA kernel is never built or executed inside this try/except, so
    genuine failures in it are not masked."""
    def _copy(i_ref, o_ref):
        o_ref[...] = i_ref[...]

    try:
        f = pl.pallas_call(
            _copy,
            out_shape=jax.ShapeDtypeStruct((8, 128), jnp.float32),
            grid=(2,),
            in_specs=[pl.BlockSpec((8, 128), lambda i: (0, 0),
                                   pipeline_mode=pl.Buffered(1))],
            out_specs=pl.BlockSpec((8, 128), lambda i: (0, 0)),
        )
        jax.jit(f).lower(jax.ShapeDtypeStruct((8, 128), jnp.float32)).compile()
        return True
    except Exception:   # capability probe only
        return False


def multi_head_attention(hidden_states, params, *, num_heads,
                         batch_block=None, out_dtype=None):
    """hidden_states: (B, S, H) float32 or bfloat16. params: dict of f32 weights.

    For lane efficiency S should be a multiple of 8 and H a multiple of 128
    (full-array blocks keep odd sizes legal, just slower)."""
    assert hidden_states.ndim == 3
    B, S, H = hidden_states.shape
    assert H % num_heads == 0, "hidden size must be divisible by num_heads"
    head_dim = H // num_heads
    scale = 1.0 / math.sqrt(head_dim)
    out_dtype = hidden_states.dtype if out_dtype is None else out_dtype

    rows_target = _rows_target_for_device()
    bb = batch_block if batch_block is not None else _pick_batch_block(B, S, rows_target)
    assert B % bb == 0
    grid = (B // bb,)

    bf16 = jnp.bfloat16
    # Fused QKV weight/bias with the score scale folded into the Q third; MXU
    # operands in bf16, biases / LN params stay f32 (added after f32 accum).
    wqkv = jnp.concatenate(
        [params["wq"] * scale, params["wk"], params["wv"]], axis=1).astype(bf16)      # (H, 3H)
    bqkv = jnp.concatenate(
        [params["bq"] * scale, params["bk"], params["bv"]], axis=1).astype(jnp.float32)  # (1, 3H)
    wd = params["wd"].astype(bf16)                                                     # (H, H)
    vecs = jnp.concatenate(
        [params["bd"], params["gamma"], params["beta"]], axis=0).astype(jnp.float32)   # (3, H)

    single_buf = _single_buffering_supported()
    weight_bufs = 1 if single_buf else 2
    x_bytes = jnp.dtype(hidden_states.dtype).itemsize
    o_bytes = jnp.dtype(out_dtype).itemsize
    vmem_limit = _vmem_limit_bytes(bb, S, H, x_bytes, o_bytes, weight_bufs)

    cost = pl.CostEstimate(
        flops=B * (8 * S * H * H + 4 * S * S * H),
        transcendentals=B * S * S,
        bytes_accessed=(B * S * H * (x_bytes + o_bytes)
                        + 2 * (3 * H * H + H * H) + 4 * 6 * H),
    )

    pm = pl.Buffered(1) if single_buf else None
    x_spec = pl.BlockSpec((bb, S, H), lambda b: (b, 0, 0))

    call = pl.pallas_call(
        functools.partial(_mha_kernel, eps=1e-12),
        out_shape=jax.ShapeDtypeStruct((B, S, H), out_dtype),
        grid_spec=pltpu.PrefetchScalarGridSpec(
            num_scalar_prefetch=0,
            grid=grid,
            in_specs=[
                x_spec,
                pl.BlockSpec((H, 3 * H), lambda b: (0, 0), pipeline_mode=pm),  # Wqkv
                pl.BlockSpec((1, 3 * H), lambda b: (0, 0), pipeline_mode=pm),  # bqkv
                pl.BlockSpec((H, H), lambda b: (0, 0), pipeline_mode=pm),      # Wdense
                pl.BlockSpec((3, H), lambda b: (0, 0), pipeline_mode=pm),      # [bd; gamma; beta]
            ],
            out_specs=pl.BlockSpec((bb, S, H), lambda b: (b, 0, 0)),
        ),
        compiler_params=pltpu.CompilerParams(
            dimension_semantics=("parallel",),
            vmem_limit_bytes=vmem_limit,
        ),
        cost_estimate=cost,
    )
    return call(hidden_states, wqkv, bqkv, wd, vecs)


def init_params(key, hidden_size):
    """Deterministic synthetic parameters.  Linear weights stored as (in, out)."""
    ks = jax.random.split(key, 8)
    std = 0.02
    H = hidden_size
    return {
        "wq": std * jax.random.normal(ks[0], (H, H), jnp.float32),
        "bq": std * jax.random.normal(ks[1], (1, H), jnp.float32),
        "wk": std * jax.random.normal(ks[2], (H, H), jnp.float32),
        "bk": std * jax.random.normal(ks[3], (1, H), jnp.float32),
        "wv": std * jax.random.normal(ks[4], (H, H), jnp.float32),
        "bv": std * jax.random.normal(ks[5], (1, H), jnp.float32),
        "wd": std * jax.random.normal(ks[6], (H, H), jnp.float32),
        "bd": std * jax.random.normal(ks[7], (1, H), jnp.float32),
        "gamma": jnp.ones((1, H), jnp.float32),
        "beta": jnp.zeros((1, H), jnp.float32),
    }


def reference(hidden_states, params, *, num_heads):
    """Pure-JAX f32 reference mirroring the PyTorch forward (eval mode)."""
    H = hidden_states.shape[-1]
    head_dim = H // num_heads
    q = hidden_states @ params["wq"] + params["bq"][0]
    k = hidden_states @ params["wk"] + params["bk"][0]
    v = hidden_states @ params["wv"] + params["bv"][0]
    scores = jnp.einsum("bsh,bth->bst", q, k) / math.sqrt(head_dim)
    probs = jax.nn.softmax(scores, axis=-1)
    ctx = jnp.einsum("bst,bth->bsh", probs, v)
    out = ctx @ params["wd"] + params["bd"][0]
    y = hidden_states + out
    mu = jnp.mean(y, axis=-1, keepdims=True)
    var = jnp.mean((y - mu) ** 2, axis=-1, keepdims=True)
    return (y - mu) / jnp.sqrt(var + 1e-12) * params["gamma"][0] + params["beta"][0]


if __name__ == "__main__":
    # Small BERT-like config: hidden=32, heads=4 (head_dim=8), seq=8, batch=2
    B, S, H, NUM_HEADS = 2, 8, 32, 4

    key = jax.random.PRNGKey(0)
    kx, kp = jax.random.split(key)
    x = jax.random.normal(kx, (B, S, H), jnp.float32)
    params = init_params(kp, H)

    out = multi_head_attention(x, params, num_heads=NUM_HEADS)
    out = jax.block_until_ready(out)

    ref = reference(x, params, num_heads=NUM_HEADS)
    assert out.shape == (B, S, H)
    # bf16 MXU operands (f32 accumulation) -> compare against the f32 reference
    # with a tolerance matching bf16 input precision.
    assert jnp.allclose(out, ref, atol=2e-2, rtol=2e-2), "mismatch vs reference"

    print("KERNEL_OK")
</pallas_src>

<mosaic_0001>
module attributes {stable_mosaic.version = 11 : i64} {
  func.func @_mha_kernel(%arg0: i32, %arg1: memref<1x8x32xf32, #tpu.memory_space<vmem>>, %arg2: memref<32x96xbf16, #tpu.memory_space<vmem>>, %arg3: memref<1x96xf32, #tpu.memory_space<vmem>>, %arg4: memref<32x32xbf16, #tpu.memory_space<vmem>>, %arg5: memref<3x32xf32, #tpu.memory_space<vmem>>, %arg6: memref<1x8x32xf32, #tpu.memory_space<vmem>>) attributes {dimension_semantics = [#tpu.dimension_semantics<parallel>], iteration_bounds = array<i64: 2>, scalar_prefetch = 0 : i64, scratch_operands = 0 : i64, tpu.core_type = #tpu.core_type<tc>, window_params = [{transform_indices = @transform_0, window_bounds = array<i64: 1, 8, 32>}, {pipeline_mode = #tpu.pipeline_mode<synchronous>, transform_indices = @transform_1, window_bounds = array<i64: 32, 96>}, {pipeline_mode = #tpu.pipeline_mode<synchronous>, transform_indices = @transform_2, window_bounds = array<i64: 1, 96>}, {pipeline_mode = #tpu.pipeline_mode<synchronous>, transform_indices = @transform_3, window_bounds = array<i64: 32, 32>}, {pipeline_mode = #tpu.pipeline_mode<synchronous>, transform_indices = @transform_4, window_bounds = array<i64: 3, 32>}, {transform_indices = @transform_5, window_bounds = array<i64: 1, 8, 32>}]} {
    %c0 = arith.constant 0 : index
    %c0_0 = arith.constant 0 : index
    %c0_1 = arith.constant 0 : index
    %0 = vector.load %arg1[%c0, %c0_0, %c0_1] : memref<1x8x32xf32, #tpu.memory_space<vmem>>, vector<1x8x32xf32>
    %1 = vector.shape_cast %0 : vector<1x8x32xf32> to vector<8x32xf32>
    %2 = vector.shape_cast %0 : vector<1x8x32xf32> to vector<8x32xf32>
    %3 = arith.truncf %2 : vector<8x32xf32> to vector<8x32xbf16>
    %c0_2 = arith.constant 0 : index
    %c0_3 = arith.constant 0 : index
    %4 = vector.load %arg2[%c0_2, %c0_3] : memref<32x96xbf16, #tpu.memory_space<vmem>>, vector<32x96xbf16>
    %cst = arith.constant dense<0.000000e+00> : vector<8x96xf32>
    %5 = tpu.matmul %3, %4, %cst {dimension_numbers = #tpu.dot_dimension_numbers<[1], [0], [0], [1], [0, 0, 1, 1], [], []>} : vector<8x32xbf16>, vector<32x96xbf16>, vector<8x96xf32> -> vector<8x96xf32>
    %c0_4 = arith.constant 0 : index
    %c0_5 = arith.constant 0 : index
    %6 = vector.load %arg3[%c0_4, %c0_5] : memref<1x96xf32, #tpu.memory_space<vmem>>, vector<1x96xf32>
    %7 = vector.broadcast %6 : vector<1x96xf32> to vector<8x96xf32>
    %8 = arith.addf %5, %7 : vector<8x96xf32>
    %9 = vector.extract_strided_slice %8 {offsets = [0, 0], sizes = [8, 32], strides = [1, 1]} : vector<8x96xf32> to vector<8x32xf32>
    %10 = vector.shape_cast %9 : vector<8x32xf32> to vector<1x8x32xf32>
    %11 = arith.truncf %10 : vector<1x8x32xf32> to vector<1x8x32xbf16>
    %12 = vector.extract_strided_slice %8 {offsets = [0, 32], sizes = [8, 32], strides = [1, 1]} : vector<8x96xf32> to vector<8x32xf32>
    %13 = vector.shape_cast %12 : vector<8x32xf32> to vector<1x8x32xf32>
    %14 = arith.truncf %13 : vector<1x8x32xf32> to vector<1x8x32xbf16>
    %15 = vector.extract_strided_slice %8 {offsets = [0, 64], sizes = [8, 32], strides = [1, 1]} : vector<8x96xf32> to vector<8x32xf32>
    %16 = vector.shape_cast %15 : vector<8x32xf32> to vector<1x8x32xf32>
    %17 = arith.truncf %16 : vector<1x8x32xf32> to vector<1x8x32xbf16>
    %cst_6 = arith.constant dense<0.000000e+00> : vector<1x8x8xf32>
    %18 = tpu.matmul %11, %14, %cst_6 {dimension_numbers = #tpu.dot_dimension_numbers<[2], [2], [1], [1], [0, 0, 0, 1, 1, 1], [0], [0]>} : vector<1x8x32xbf16>, vector<1x8x32xbf16>, vector<1x8x8xf32> -> vector<1x8x8xf32>
    %cst_7 = arith.constant dense<0xFF800000> : vector<1x8xf32>
    %19 = vector.multi_reduction <maximumf>, %18, %cst_7 [2] : vector<1x8x8xf32> to vector<1x8xf32>
    %20 = vector.shape_cast %19 : vector<1x8xf32> to vector<1x8x1xf32>
    %21 = vector.broadcast %20 : vector<1x8x1xf32> to vector<1x8x8xf32>
    %22 = arith.subf %18, %21 : vector<1x8x8xf32>
    %23 = math.exp %22 : vector<1x8x8xf32>
    %cst_8 = arith.constant dense<0.000000e+00> : vector<1x8xf32>
    %24 = vector.multi_reduction <add>, %23, %cst_8 [2] : vector<1x8x8xf32> to vector<1x8xf32>
    %25 = vector.shape_cast %24 : vector<1x8xf32> to vector<1x8x1xf32>
    %26 = tpu.reciprocal %25 {approx = true} : vector<1x8x1xf32> -> vector<1x8x1xf32>
    %27 = vector.broadcast %26 : vector<1x8x1xf32> to vector<1x8x8xf32>
    %28 = arith.mulf %23, %27 : vector<1x8x8xf32>
    %29 = arith.truncf %28 : vector<1x8x8xf32> to vector<1x8x8xbf16>
    %cst_9 = arith.constant dense<0.000000e+00> : vector<1x8x32xf32>
    %30 = tpu.matmul %29, %17, %cst_9 {dimension_numbers = #tpu.dot_dimension_numbers<[2], [1], [1], [2], [0, 0, 0, 1, 1, 2], [0], [0]>} : vector<1x8x8xbf16>, vector<1x8x32xbf16>, vector<1x8x32xf32> -> vector<1x8x32xf32>
    %c0_10 = arith.constant 0 : index
    %c0_11 = arith.constant 0 : index
    %31 = vector.load %arg5[%c0_10, %c0_11] : memref<3x32xf32, #tpu.memory_space<vmem>>, vector<3x32xf32>
    %32 = vector.extract_strided_slice %31 {offsets = [0, 0], sizes = [1, 32], strides = [1, 1]} : vector<3x32xf32> to vector<1x32xf32>
    %33 = vector.extract_strided_slice %31 {offsets = [1, 0], sizes = [1, 32], strides = [1, 1]} : vector<3x32xf32> to vector<1x32xf32>
    %34 = vector.extract_strided_slice %31 {offsets = [2, 0], sizes = [1, 32], strides = [1, 1]} : vector<3x32xf32> to vector<1x32xf32>
    %35 = vector.shape_cast %30 : vector<1x8x32xf32> to vector<8x32xf32>
    %36 = arith.truncf %35 : vector<8x32xf32> to vector<8x32xbf16>
    %c0_12 = arith.constant 0 : index
    %c0_13 = arith.constant 0 : index
    %37 = vector.load %arg4[%c0_12, %c0_13] : memref<32x32xbf16, #tpu.memory_space<vmem>>, vector<32x32xbf16>
    %cst_14 = arith.constant dense<0.000000e+00> : vector<8x32xf32>
    %38 = tpu.matmul %36, %37, %cst_14 {dimension_numbers = #tpu.dot_dimension_numbers<[1], [0], [0], [1], [0, 0, 1, 1], [], []>} : vector<8x32xbf16>, vector<32x32xbf16>, vector<8x32xf32> -> vector<8x32xf32>
    %39 = vector.broadcast %32 : vector<1x32xf32> to vector<8x32xf32>
    %40 = arith.addf %38, %39 : vector<8x32xf32>
    %41 = arith.addf %1, %40 : vector<8x32xf32>
    %cst_15 = arith.constant dense<0.000000e+00> : vector<8xf32>
    %42 = vector.multi_reduction <add>, %41, %cst_15 [1] : vector<8x32xf32> to vector<8xf32>
    %43 = vector.shape_cast %42 : vector<8xf32> to vector<8x1xf32>
    %cst_16 = arith.constant 3.200000e+01 : f32
    %44 = vector.broadcast %cst_16 : f32 to vector<8x1xf32>
    %45 = arith.divf %43, %44 : vector<8x1xf32>
    %46 = vector.broadcast %45 : vector<8x1xf32> to vector<8x32xf32>
    %47 = arith.subf %41, %46 : vector<8x32xf32>
    %48 = arith.mulf %47, %47 : vector<8x32xf32>
    %cst_17 = arith.constant dense<0.000000e+00> : vector<8xf32>
    %49 = vector.multi_reduction <add>, %48, %cst_17 [1] : vector<8x32xf32> to vector<8xf32>
    %50 = vector.shape_cast %49 : vector<8xf32> to vector<8x1xf32>
    %cst_18 = arith.constant 3.200000e+01 : f32
    %51 = vector.broadcast %cst_18 : f32 to vector<8x1xf32>
    %52 = arith.divf %50, %51 : vector<8x1xf32>
    %cst_19 = arith.constant 9.99999996E-13 : f32
    %53 = vector.broadcast %cst_19 : f32 to vector<8x1xf32>
    %54 = arith.addf %52, %53 : vector<8x1xf32>
    %55 = math.rsqrt %54 : vector<8x1xf32>
    %56 = vector.broadcast %55 : vector<8x1xf32> to vector<8x32xf32>
    %57 = arith.mulf %47, %56 : vector<8x32xf32>
    %58 = vector.broadcast %33 : vector<1x32xf32> to vector<8x32xf32>
    %59 = arith.mulf %57, %58 : vector<8x32xf32>
    %60 = vector.broadcast %34 : vector<1x32xf32> to vector<8x32xf32>
    %61 = arith.addf %59, %60 : vector<8x32xf32>
    %62 = vector.shape_cast %61 : vector<8x32xf32> to vector<1x8x32xf32>
    %c0_20 = arith.constant 0 : index
    %c0_21 = arith.constant 0 : index
    %c0_22 = arith.constant 0 : index
    %63 = vector.load %arg6[%c0_20, %c0_21, %c0_22] : memref<1x8x32xf32, #tpu.memory_space<vmem>>, vector<1x8x32xf32>
    tpu.vector_store %arg6[%c0_20, %c0_21, %c0_22], %62 {strides = array<i32>} : memref<1x8x32xf32, #tpu.memory_space<vmem>>, vector<1x8x32xf32>,
    return
  }
  func.func @transform_0(%arg0: i32) -> (i32, i32, i32) {
    %c0_i32 = arith.constant 0 : i32
    %c0_i32_0 = arith.constant 0 : i32
    %c0_i32_1 = arith.constant 0 : i32
    return %arg0, %c0_i32, %c0_i32_0 : i32, i32, i32
  }
  func.func @transform_1(%arg0: i32) -> (i32, i32) {
    %c0_i32 = arith.constant 0 : i32
    %c0_i32_0 = arith.constant 0 : i32
    %c0_i32_1 = arith.constant 0 : i32
    return %c0_i32, %c0_i32_0 : i32, i32
  }
  func.func @transform_2(%arg0: i32) -> (i32, i32) {
    %c0_i32 = arith.constant 0 : i32
    %c0_i32_0 = arith.constant 0 : i32
    %c0_i32_1 = arith.constant 0 : i32
    return %c0_i32, %c0_i32_0 : i32, i32
  }
  func.func @transform_3(%arg0: i32) -> (i32, i32) {
    %c0_i32 = arith.constant 0 : i32
    %c0_i32_0 = arith.constant 0 : i32
    %c0_i32_1 = arith.constant 0 : i32
    return %c0_i32, %c0_i32_0 : i32, i32
  }
  func.func @transform_4(%arg0: i32) -> (i32, i32) {
    %c0_i32 = arith.constant 0 : i32
    %c0_i32_0 = arith.constant 0 : i32
    %c0_i32_1 = arith.constant 0 : i32
    return %c0_i32, %c0_i32_0 : i32, i32
  }
  func.func @transform_5(%arg0: i32) -> (i32, i32, i32) {
    %c0_i32 = arith.constant 0 : i32
    %c0_i32_0 = arith.constant 0 : i32
    %c0_i32_1 = arith.constant 0 : i32
    return %arg0, %c0_i32, %c0_i32_0 : i32, i32, i32
  }
}

</mosaic_0001>

<bundles_post_ra>
// kernel: tpu_custom_call.1
= control target key start
LH: loop header
LB: loop body
LE: loop exit
PB: predicated region body
PF: predicated region fallthrough
CT: control target
= control target key end

     0   :  { %10 = vsyncpa [#allocation3], 0  ;;  %s1247_s0 = inlined_call_operand.hbm [shape: f32[2,8,32], index: 0, kind: input, shape index: {}]   ;;  %s1248_s1 = inlined_call_operand.hbm [shape: bf16[32,96], index: 1, kind: input, shape index: {}]   ;;  %s1249_s2 = inlined_call_operand.vmem [shape: f32[1,96], index: 2, kind: input, shape index: {}]   ;;  %s1250_s3 = inlined_call_operand.hbm [shape: bf16[32,32], index: 3, kind: input, shape index: {}]   ;;  %s1251_s4 = inlined_call_operand.vmem [shape: f32[3,32], index: 4, kind: input, shape index: {}]   ;;  %s1252_s5 = inlined_call_operand.hbm [shape: f32[2,8,32], index: 5, kind: output, shape index: {}]  }
   0x1   :  { %12 = vsyncpa [#allocation3 + $0x1], 0 }
   0x2   :  { %13 = vsyncpa [#allocation6], 0 }
   0x3   :  { %14 = vsyncpa [#allocation4], 0 }
   0x4   :  { %16 = vsyncpa [#allocation4 + $0x1], 0  ;;  %s989_s18 = smov 0   ;;  %s991_s19 = smov 0  }
   0x5   :  { %s993_s20 = smov 0   ;;  %s995_s21 = smov 0  }
   0x6 LB: > { %s1010_s22 = sadd.s32 4294967295, %s947_s21   ;;  %s645_s23 = sadd.s32 4294967294, %s947_s21   ;;  %s947_s21 = sphi %s995_s21, %s1272_s21   ;;  %s943_s20 = sphi %s993_s20, %s1271_s20   ;;  %s939_s19 = sphi %s991_s19, %s1270_s19   ;;  %s935_s18 = sphi %s989_s18, %s1269_s18  }
   0x7   : > { %p42_p0 = scmp.ne.s32.totalorder %s939_s19, %s935_s18  ;;  %p1253_p1 = scmp.eq.s32.totalorder %s1010_s22, 0 }
   0x8   : > { %p156_p3 = scmp.eq.s32.totalorder %s645_s23, 1  ;;  %p646_p5 = scmp.ge.s32.totalorder %s947_s21, 1 }
   0x9   : > { %p1019_p4 = por %p1253_p1, %p42_p0  ;;  %p163_p7 = scmp.lt.s32.totalorder %s947_s21, 3 }
   0xa   : > { %p1024_p6 = por %p156_p3, %p42_p0  ;;  %s949_s27 = smov [#allocation5]  }
   0xb   : > { %s1256_s24 = scalar_select %p1019_p4, 1, 0 }
   0xc   : > { %s1257_s25 = scalar_select %p1024_p6, 1, 0 }
   0xd   : > { %p1029_p8 = pnand %p646_p5, %p163_p7  ;;  %s175_s28 = sshll.u32 %s949_s27, 4  ;;  %s1033_s28 = int_to_ptr.vmem [resolvable:$true] %s175_s28 }
   0xe   : > { %s950_s30 = smov [#allocation7]   ;;  %s791_s9 = scalar_lea.hbm %s1248_s1, 256 }
   0xf   : > { %p720_p9 = pneg %p1029_p8  ;;  %s191_s6 = sshll.u32 %s950_s30, 4  ;;  %s1044_s6 = int_to_ptr.vmem [resolvable:$true] %s191_s6 }
  0x10   : > { %p792_p12 = scmp.ne.s32.totalorder %s1248_s1, %s791_s9  ;;  %p798_p5 = scmp.lt.u32.totalorder %s791_s9, %s1248_s1 }
  0x11   : > { %p1040_p11 = pnand %p720_p9, %p1253_p1 }
  0x13   : > { %p793_p13 = pneg %p1040_p11 }
  0x15   : > { %p794_p0 = pnand %p793_p13, %p792_p12 }
  0x17   : > { %p795_p3 = pneg %p794_p0 }
  0x19   : > { %p800_p7 = pnand %p798_p5, %p795_p3 }
  0x1b   : > { %803 = shalt.err (!%p800_p7)
}
  0x1c   : > { %s804_s14 = scalar_lea.vmem %s1033_s28, 256  ;;  %p812_p2 = scmp.lt.s32.totalorder %s1033_s28, %s1033_s28 }
  0x1d   : > { %p805_p9 = scmp.ne.s32.totalorder %s1033_s28, %s804_s14  ;;  %p813_p12 = scmp.lt.s32.totalorder %s804_s14, %s804_s14 }
  0x1f   : > { %p807_p10 = pnand %p805_p9, %p793_p13  ;;  %p814_p0 = por %p813_p12, %p812_p2 }
  0x21   : > { %p808_p1 = pneg %p807_p10 }
  0x23   : > { %p815_p6 = pnand %p814_p0, %p808_p1 }
  0x25   : > { %818 = shalt.err (!%p815_p6)
}
  0x26   : > { %s951_s15 = smov 64   ;;  %s952_s16 = smov 4  }
  0x27   : > { %723 = dma.hbm_to_vmem [thread:$0]  (!%p1040_p11), %s1248_s1, 256, %s1033_s28, [#allocation6], %s951_s15, %s951_s15, %s952_s16  }
  0x28   : > { %s819_s7 = scalar_lea.hbm %s1250_s3, 256 }
  0x29   : > { %p820_p2 = scmp.ne.s32.totalorder %s1250_s3, %s819_s7  ;;  %p826_p10 = scmp.lt.u32.totalorder %s819_s7, %s1250_s3 }
  0x2b   : > { %p822_p1 = pnand %p820_p2, %p793_p13 }
  0x2d   : > { %p823_p6 = pneg %p822_p1 }
  0x2f   : > { %p828_p3 = pnand %p826_p10, %p823_p6 }
  0x31   : > { %831 = shalt.err (!%p828_p3)
}
  0x32   : > { %s832_s28 = scalar_lea.vmem %s1044_s6, 256  ;;  %p840_p12 = scmp.lt.s32.totalorder %s1044_s6, %s1044_s6 }
  0x33   : > { %p833_p5 = scmp.ne.s32.totalorder %s1044_s6, %s832_s28  ;;  %p841_p0 = scmp.lt.s32.totalorder %s832_s28, %s832_s28 }
  0x35   : > { %p835_p7 = pnand %p833_p5, %p793_p13  ;;  %p842_p2 = por %p841_p0, %p840_p12 }
  0x37   : > { %p836_p9 = pneg %p835_p7 }
  0x39   : > { %p843_p1 = pnand %p842_p2, %p836_p9 }
  0x3b   : > { %846 = shalt.err (!%p843_p1)
}
  0x3c   : > { %726 = dma.hbm_to_vmem [thread:$0]  (!%p1040_p11), %s1250_s3, 256, %s1044_s6, [#allocation6], %s951_s15, %s951_s15, %s952_s16  }
  0x3d   : > { %s1099_s14 = sadd.s32 1, %s947_s21   ;;  %s29_s29 = sadd.s32 1, %s943_s20 }
  0x3e   : > { %s26_s17 = ssub.s32 %s947_s21, %s1099_s14  ;;  %p36_p13 = scmp.ne.s32.totalorder %s943_s20, %s939_s19 }
  0x3f   : > { %p27_p6 = scmp.eq.s32.totalorder %s26_s17, 0  ;;  %p37_p10 = scmp.eq.s32.totalorder %s947_s21, 0 }
  0x40   : > { %p1260_p3 = scmp.eq.s32.totalorder %s1010_s22, 1  ;;  %p737_p7 = scmp.lt.s32.totalorder %s947_s21, 2 }
  0x41   : > { %s1115_s27 = scalar_select %p27_p6, %s943_s20, %s29_s29  }
  0x42   : > { %p1109_p5 = por %p1260_p3, %p36_p13  ;;  %p38_p9 = por %p37_p10, %p36_p13 }
  0x43   : > { %s208_s30 = sand.u32 1, %s943_s20   ;;  %s651_s6 = sshll.u32 %s947_s21, 7 }
  0x44   : > { %s1261_s23 = scalar_select %p1109_p5, 1, 0 }
  0x45   : > { %s650_s7 = sshll.u32 %s208_s30, 3  ;;  %s1122_s8 = scalar_lea.hbm %s1247_s0, %s651_s6 }
  0x46   : > { %s212_s9 = scalar_lea.vmem [#allocation2], %s650_s7  ;;  %p1126_p11 = pnand %p737_p7, %p38_p9 }
  0x47   : > { %s219_s10 = sshll.u32 %s212_s9, 4  ;;  %s209_s28 = scalar_lea.sflag [#allocation3], %s208_s30  ;;  %s1124_s10 = int_to_ptr.vmem [resolvable:$true] %s219_s10 }
  0x48   : > { %s847_s12 = scalar_lea.hbm %s1122_s8, 128  ;;  %p849_p0 = pneg %p1126_p11 }
  0x49   : > { %p848_p12 = scmp.ne.s32.totalorder %s1122_s8, %s847_s12  ;;  %s852_s17 = scalar_lea.hbm %s1247_s0, 256 }
  0x4a   : > { %p853_p13 = scmp.lt.u32.totalorder %s1122_s8, %s1247_s0  ;;  %p854_p6 = scmp.lt.u32.totalorder %s852_s17, %s847_s12 }
  0x4b   : > { %p850_p2 = pnand %p849_p0, %p848_p12  ;;  %p856_p3 = scmp.lt.u32.totalorder %s847_s12, %s1122_s8 }
  0x4c   : > { %p855_p10 = por %p854_p6, %p853_p13 }
  0x4d   : > { %p851_p1 = pneg %p850_p2 }
  0x4e   : > { %p857_p7 = por %p856_p3, %p855_p10 }
  0x50   : > { %p858_p9 = pnand %p857_p7, %p851_p1 }
  0x52   : > { %861 = shalt.err (!%p858_p9)
}
  0x53   : > { %s862_s30 = scalar_lea.vmem %s1124_s10, 128  ;;  %s953_s15 = smov [#allocation2]  }
  0x54   : > { %p863_p12 = scmp.ne.s32.totalorder %s1124_s10, %s862_s30  ;;  %s867_s16 = sshll.u32 %s953_s15, 4  ;;  %s868_s16 = int_to_ptr.vmem [resolvable:$false] %s867_s16 }
  0x55   : > { %s869_s9 = scalar_lea.vmem %s868_s16, 256  ;;  %p870_p4 = scmp.lt.s32.totalorder %s1124_s10, %s868_s16 }
  0x56   : > { %p865_p2 = pnand %p863_p12, %p849_p0  ;;  %p871_p13 = scmp.lt.s32.totalorder %s869_s9, %s862_s30 }
  0x58   : > { %p866_p5 = pneg %p865_p2  ;;  %p872_p6 = por %p871_p13, %p870_p4 }
  0x5a   : > { %p873_p10 = pnand %p872_p6, %p866_p5 }
  0x5c   : > { %876 = shalt.err (!%p873_p10)
}
  0x5d   : > { %730 = dma.hbm_to_vmem [thread:$0]  (!%p1126_p11), %s1122_s8, 128, %s1124_s10, %s209_s28  }
  0x5e   : > { %228 = sbr.rel (%p1029_p8) target bundleno = 1739 (0x6cb), region = 40  ;;  %s1158_s12 = sand.u32 (!%p1029_p8), 1, %s939_s19  }
  0x5f   : > { %s653_s13 = sshll.u32 (!%p1029_p8), %s1158_s12, 3  ;;  %s231_s29 = scalar_lea.sflag (!%p1029_p8), [#allocation3], %s1158_s12 }
  0x60   : > { %s234_s17 = scalar_lea.vmem (!%p1029_p8), [#allocation2], %s653_s13  ;;  %p1263_p4 = scmp.ne.s32.totalorder (!%p1029_p8), %s1256_s24, 0 }
  0x65   : > { %922 = dma.done.wait (%p1263_p4), %s231_s29, 128  }
  0x66   : > { %924 = vsyncadd (%p1263_p4), %s231_s29, 4294967168  ;;  %p1264_p5 = scmp.eq.s32.totalorder %s1010_s22, 0 }
  0x68   : > { %926 = dma.done.wait (%p1264_p5), [#allocation6], 512   ;;  %p1265_p8 = pmov %p1264_p5 }
  0x69   : > { %v954_v0 = vmov 0.0   ;;  %vm955_vm0 = vmmov 0   ;;  %v781_v1 = vld [vmem:[#allocation5] sm:$0xff]   ;;  %v782_v2 = vld [vmem:[#allocation5 + $0x8] sm:$0xff]   ;;  %v1174_v3 = vld [vmem:[%s234_s17] sm:$0xff]  ;;  %vm295_vm1 = vcmask 261120   ;;  %v457_v37 = vlaneseq }
  0x6a   : > { %928 = vsyncadd (%p1265_p8), [#allocation6], 4294966784  ;;  %680 = vmatprep.subr.bf16.mxu0 %v954_v0  ;;  %684 = vmatprep.mubr.msk.bf16.mxu0 %vm955_vm0, %v954_v0  ;;  %v271_v4 = vpack.c.bf16 %v1174_v3, %v1174_v3  ;;  %v657_v5 = vld [vmem:[%s1249_s2] ss:$0 sm:$0xff]  ;;  %s956_s8 = smov 96   ;;  %vm389_vm2 = vcmask 64512  }
  0x6b   : > { %688 = vmatprep.subr.bf16.mxu1 %v954_v0  ;;  %690 = vmatprep.mubr.msk.bf16.mxu1 %vm955_vm0, %v954_v0  ;;  %s957_s10 = smov 64   ;;  %v783_v24 = vld [vmem:[#allocation7] sm:$0xff]   ;;  %v784_v25 = vld [vmem:[#allocation7 + $0x8] sm:$0xff]   ;;  %vm407_vm3 = vcmask 1043456   ;;  %v458_v38 = vshrl.u32 %v457_v37, 7  ;;  %s667_s7 = sshll.u32 %s1010_s22, 7 }
  0x6c   : > { %681 = vmatpush3.bf16.msra.mxu0 %v781_v1  ;;  %v451_v40 = vld [vmem:[%s1251_s4] sm:$0x7]  ;;  %s268_s6 = scalar_lea.vmem [#allocation8], %s653_s13  ;;  %s1202_s9 = scalar_lea.hbm %s1252_s5, %s667_s7 }
  0x6d   : > { %682 = vmatprep.subr.bf16.mxu0 %v954_v0  ;;  %v459_v39 = vsub.s32 0, %v458_v38  ;;  %v533_v57 = vsub.s32 1, %v458_v38  ;;  %v538_v58 = vsub.s32 2, %v458_v38  ;;  %s556_s30 = sshll.u32 %s268_s6, 4  ;;  %s543_s29 = scalar_lea.sflag [#allocation4], %s1158_s12  ;;  %s1204_s30 = int_to_ptr.vmem [resolvable:$true] %s556_s30 }
  0x6e   : > { %s877_s17 = scalar_lea.vmem %s1204_s30, 128  ;;  %p1266_p0 = scmp.ne.s32.totalorder %s1261_s23, 0 }
  0x6f   : > { %v460_v41 = vrot.slane %v451_v40, %v459_v39  ;;  %v534_v59 = vrot.slane %v451_v40, %v533_v57  ;;  %v539_v61 = vrot.slane %v451_v40, %v538_v58  ;;  %p878_p11 = scmp.ne.s32.totalorder %s1204_s30, %s877_s17  ;;  %s958_s22 = smov [#allocation8]  }
  0x70   : > { %683 = vmatpush3.bf16.msra.mxu0 %v782_v2  ;;  %s881_s13 = sshll.u32 %s958_s22, 4  ;;  %s882_s13 = int_to_ptr.vmem [resolvable:$false] %s881_s13 }
  0x71   : > { %694 = vmatprep.subr.bf16.mxu0 %v954_v0  ;;  %p879_p1 = pnand %p878_p11, %p1266_p0  ;;  %s883_s24 = scalar_lea.vmem %s882_s13, 256 }
  0x72   : > { %p884_p7 = scmp.lt.s32.totalorder %s1204_s30, %s882_s13  ;;  %p885_p9 = scmp.lt.s32.totalorder %s883_s24, %s877_s17 }
  0x73   : > { %685 = vmatmul.mubr.msk.bf16.vlgmr.msra.gmra.mrb[0].mxu0 %vm295_vm1, %v271_v4  ;;  %p880_p3 = pneg %p879_p1 }
  0x74   : > { %696 = vmatprep.mubr.msk.bf16.mxu0 %vm955_vm0, %v954_v0  ;;  %p886_p12 = por %p885_p9, %p884_p7 }
  0x76   : > { %p887_p2 = pnand %p886_p12, %p880_p3 }
 0x146   : > { %v333_v6 = vpop.f32.mrb[0].mxu0 }
 0x147   : > { %v334_v7 = vadd.f32 %v657_v5, %v333_v6  ;;  %v686_v8 = vpop.f32.mrb[1].mxu0 }
 0x148   : > { %v336_v9 = vpop.f32.mrb[2].mxu0 }
 0x149   : > { %v339_v10 = vpack.c.bf16 %v334_v7, %v334_v7  ;;  %v687_v11 = vpop.f32.mrb[3].mxu0 }
 0x14b   : > { %341 = vrot.lane.b32.xlu0 %v339_v10, %s956_s8 }
 0x1bd   : > { %v342_v12 = vpop.permute.xlu0 %341 }
 0x1be   : > { %v347_v13 = vsel %vm295_vm1, %v342_v12, 0 }
 0x1bf   : > { %689 = vmatpush3.bf16.xpose.msra.mxu1 %v347_v13 }
 0x1c0   : > { %700 = vmatprep.subr.bf16.mxu1 %v954_v0 }
 0x1c6   : > { %691 = vmatmul.mubr.msk.bf16.vlgmr.msra.gmra.mrb[0].mxu1 %vm295_vm1, %v339_v10 }
 0x1c7   : > { %704 = vmatprep.mubr.msk.bf16.mxu1 %vm955_vm0, %v954_v0  ;;  %701 = vmatpush3.bf16.msra.mxu1 %v783_v24 }
 0x1c8   : > { %702 = vmatprep.subr.bf16.mxu1 %v954_v0 }
 0x1cb   : > { %703 = vmatpush3.bf16.msra.mxu1 %v784_v25 }
 0x299   : > { %v383_v14 = vpop.f32.mrb[0].mxu1 }
 0x29a   : > { %v692_v15 = vpop.f32.mrb[1].mxu1  ;;  %v390_v16 = vsel %vm389_vm2, %v383_v14, -inf }
 0x29b   : > { %391 = vmax.xlane.f32.xlu0 %v390_v16  ;;  %v386_v17 = vpop.f32.mrb[2].mxu1 }
 0x29c   : > { %v693_v18 = vpop.f32.mrb[3].mxu1 }
 0x328   : > { %v392_v19 = vpop.xlane.xlu0 %391 }
 0x329   : > { %v393_v20 = vsub.f32 %v383_v14, %v392_v19 }
 0x32b   : > { %v394_v21 = vmul.f32 1.442695, %v393_v20 }
 0x32d   : > { %785 = vpow2.f32 %v394_v21 }
 0x337   : > { %v786_v22 = vpop.eup %785 }
 0x338   : > { %v396_v23 = vsel %vm389_vm2, %v786_v22, 0.0 }
 0x339   : > { %397 = vadd.xlane.f32.xlu1 %v396_v23 }
 0x34a   : > { %402 = vrot.lane.b32.xlu1 %v339_v10, %s957_s10 }
 0x3c6   : > { %v398_v26 = vpop.xlane.xlu1 %397 }
 0x3c7   : > { %787 = vrcp.f32 %v398_v26 }
 0x3ca   : > { %v403_v27 = vpop.permute.xlu1 %402 }
 0x3cb   : > { %v409_v28 = vsel %vm407_vm3, %v403_v27, 0 }
 0x3cc   : > { %695 = vmatpush3.bf16.msra.mxu0 %v409_v28 }
 0x3d1   : > { %v788_v29 = vpop.eup %787 }
 0x3d2   : > { %v400_v30 = vmul.f32 %v788_v29, %v786_v22 }
 0x3d4   : > { %v401_v31 = vpack.c.bf16 %v400_v30, %v400_v30 }
 0x3d6   : > { %697 = vmatmul.mubr.msk.bf16.vlgmr.msra.gmra.mrb[4].mxu0 %vm389_vm2, %v401_v31 }
 0x4a9   : > { %v445_v32 = vpop.f32.mrb[4].mxu0 }
 0x4aa   : > { %v452_v33 = vpack.c.bf16 %v445_v32, %v445_v32  ;;  %v698_v34 = vpop.f32.mrb[5].mxu0 }
 0x4ab   : > { %v448_v35 = vpop.f32.mrb[6].mxu0 }
 0x4ac   : > { %v699_v36 = vpop.f32.mrb[7].mxu0  ;;  %705 = vmatmul.mubr.msk.bf16.vlgmr.msra.gmra.mrb[4].mxu1 %vm295_vm1, %v452_v33 }
 0x57f   : > { %v510_v42 = vpop.f32.mrb[4].mxu1 }
 0x580   : > { %v511_v43 = vadd.f32 %v510_v42, %v460_v41  ;;  %v706_v44 = vpop.f32.mrb[5].mxu1 }
 0x581   : > { %v513_v45 = vpop.f32.mrb[6].mxu1 }
 0x582   : > { %v707_v46 = vpop.f32.mrb[7].mxu1  ;;  %v516_v47 = vadd.f32 %v511_v43, %v1174_v3 }
 0x584   : > { %v517_v48 = vsel %vm295_vm1, %v516_v47, 0.0 }
 0x585   : > { %518 = vadd.xlane.f32.xlu1 %v517_v48 }
 0x612   : > { %v519_v49 = vpop.xlane.xlu1 %518 }
 0x613   : > { %v521_v50 = vmul.f32 0.03125, %v519_v49 }
 0x615   : > { %v522_v51 = vsub.f32 %v516_v47, %v521_v50 }
 0x617   : > { %v523_v52 = vmul.f32 %v522_v51, %v522_v51 }
 0x619   : > { %v524_v53 = vsel %vm295_vm1, %v523_v52, 0.0 }
 0x61a   : > { %525 = vadd.xlane.f32.xlu0 %v524_v53 }
 0x6a7   : > { %v526_v54 = vpop.xlane.xlu0 %525 }
 0x6a8   : > { %v527_v55 = vmul.f32 0.03125, %v526_v54 }
 0x6aa   : > { %v528_v56 = vadd.f32 1e-12, %v527_v55 }
 0x6ac   : > { %789 = vrsqrt.f32 %v528_v56 }
 0x6b6   : > { %v790_v60 = vpop.eup %789 }
 0x6b7   : > { %v530_v62 = vmul.f32 %v790_v60, %v522_v51 }
 0x6b9   : > { %v535_v63 = vmul.f32 %v534_v59, %v530_v62 }
 0x6bb   : > { %v540_v0 = vadd.f32 %v539_v61, %v535_v63 }
 0x6bd   : > { %541 = vst.msk [vmem:[%s268_s6] sm:$0xff] %vm295_vm1, %v540_v0 }
 0x6be   : > { %890 = shalt.err (!%p887_p2)
}
 0x6bf   : > { %s891_s12 = scalar_lea.hbm %s1202_s9, 128  ;;  %s895_s10 = scalar_lea.hbm %s1252_s5, 256 }
 0x6c0   : > { %p892_p13 = scmp.ne.s32.totalorder %s1202_s9, %s891_s12  ;;  %p896_p4 = scmp.lt.u32.totalorder %s1202_s9, %s1252_s5 }
 0x6c1   : > { %p897_p5 = scmp.lt.u32.totalorder %s895_s10, %s891_s12  ;;  %p899_p11 = scmp.lt.u32.totalorder %s891_s12, %s1202_s9 }
 0x6c2   : > { %p893_p6 = pnand %p892_p13, %p1266_p0 }
 0x6c3   : > { %p898_p8 = por %p897_p5, %p896_p4 }
 0x6c4   : > { %p894_p10 = pneg %p893_p6 }
 0x6c5   : > { %p900_p1 = por %p899_p11, %p898_p8 }
 0x6c7   : > { %p901_p3 = pnand %p900_p1, %p894_p10 }
 0x6c9   : > { %904 = shalt.err (!%p901_p3)
}
 0x6ca   : > { %718 = dma.vmem_to_hbm [thread:$0]  (%p1266_p0), %s1204_s30, 128, %s1202_s9, %s543_s29  }
 0x6cb PF: > { %s568_s7 = sand.u32 1, %s935_s18   ;;  %p1267_p7 = scmp.ne.s32.totalorder %s1257_s25, 0 }
 0x6cc   : > { %p1268_p9 = scmp.ge.s32.totalorder %s947_s21, 2  ;;  %s569_s6 = scalar_lea.sflag [#allocation4], %s568_s7 }
 0x6ce   : > { %p732_p12 = pnand %p1268_p9, %p1267_p7 }
 0x6d0   : > { %930 = dma.done.wait (!%p732_p12), %s569_s6, 128  }
 0x6d1   : > { %932 = vsyncadd (!%p732_p12), %s569_s6, 4294967168  ;;  %p19_p2 = scmp.ge.s32.totalorder %s1099_s14, 4   ;;  %s1269_s18 = smov %s939_s19 }
 0x6d2   : > { %s1270_s19 = smov %s943_s20  ;;  %s1271_s20 = smov %s1115_s27 }
 0x6d3   : > { %s1272_s21 = smov %s1099_s14  ;;  %21 = sbr.rel (!%p19_p2) target bundleno = 6 (0x6), region = 93 }
 0x6da   :  { %574 = vsyncpa [#allocation3], 1 }
 0x6db   :  { %576 = vsyncpa [#allocation3 + $0x1], 1 }
 0x6dc   :  { %577 = vsyncpa [#allocation6], 1 }
 0x6dd   :  { %578 = vsyncpa [#allocation4], 1 }
 0x6de   :  { %580 = vsyncpa [#allocation4 + $0x1], 1 }

</bundles_post_ra>
